<compile_context>
chip_gen: v7x
topology: tpu7x:2x2x1
jax: 0.10.0
libtpu: 0.0.40
codegen_flags: <defaults>
</compile_context>

<pallas_src>
import functools

import numpy as np
import jax
import jax.numpy as jnp
from jax.experimental import pallas as pl
from jax.experimental.pallas import tpu as pltpu


def _tv_kernel(x_ref, mask_ref, out_ref, acc_ref, *, shift_w, shift_h):
    """Accumulate masked TV contributions of one (tile_b, HWp) block."""
    i = pl.program_id(1)  # inner ("arbitrary") reduction axis

    @pl.when(i == 0)
    def _():
        acc_ref[...] = jnp.zeros_like(acc_ref)

    x = x_ref[...].astype(jnp.float32)          # (tile_b, HWp)
    mask_w = mask_ref[0:1, :]                   # (1, HWp): valid right-neighbor diffs
    mask_h = mask_ref[1:2, :]                   # (1, HWp): valid below-neighbor diffs

    # Right neighbor x[s+1] and below neighbor x[s+W] via XLU rotates (positive
    # shifts; roll follows np.roll semantics).  Wrapped / row-boundary / padded
    # positions are zeroed by the masks, so only pure VPU work remains.
    x_r = pltpu.roll(x, shift=shift_w, axis=1)  # x[(s+1) mod HWp]
    x_d = pltpu.roll(x, shift=shift_h, axis=1)  # x[(s+W) mod HWp]

    acc_ref[...] += jnp.abs(x_r - x) * mask_w + jnp.abs(x_d - x) * mask_h

    @pl.when(i == pl.num_programs(1) - 1)
    def _():
        # Single cross-lane/sublane reduce per core, once at the very end.
        out_ref[...] = jnp.sum(acc_ref[...]).reshape(1, 1, 1)


def _tv_partial(x2, masks, *, tile_b, cores, inner, shift_w, shift_h):
    """Sum of TV contributions over rows [0, cores*inner*tile_b) of x2."""
    _, HWp = x2.shape
    kernel = functools.partial(_tv_kernel, shift_w=shift_w, shift_h=shift_h)
    out = pl.pallas_call(
        kernel,
        out_shape=jax.ShapeDtypeStruct((cores, 1, 1), jnp.float32),
        grid_spec=pltpu.PrefetchScalarGridSpec(
            num_scalar_prefetch=0,
            grid=(cores, inner),
            in_specs=[
                pl.BlockSpec((tile_b, HWp), lambda c, i: (c * inner + i, 0)),
                # Tiny constant mask table; block index never changes -> stays
                # resident, no per-step re-DMA.
                pl.BlockSpec((2, HWp), lambda c, i: (0, 0)),
            ],
            out_specs=pl.BlockSpec((1, 1, 1), lambda c, i: (c, 0, 0)),
            scratch_shapes=[pltpu.VMEM((tile_b, HWp), jnp.float32)],
        ),
        compiler_params=pltpu.CompilerParams(
            dimension_semantics=("parallel", "arbitrary"),
            vmem_limit_bytes=40 * 1024 * 1024,
        ),
    )(x2, masks)
    return jnp.sum(out)


def tv_loss(x, *, tile_b=None):
    """Matches TVLoss.forward for an NCHW input tensor."""
    assert x.ndim == 4, "expected NCHW input"
    N, C, H, W = x.shape
    B = N * C
    HW = H * W

    # Lane-dense view: all spatial structure lives on the 128-lane axis.
    x2 = x.reshape(B, HW)
    HWp = ((HW + 127) // 128) * 128
    if HWp != HW:
        # TODO(synk): fold this pad into per-block in-kernel masking to avoid
        # the extra HBM copy when H*W is not a multiple of 128.
        x2 = jnp.pad(x2, ((0, 0), (0, HWp - HW)))

    # 0/1 masks for valid difference positions (computed once at trace time).
    s = np.arange(HWp)
    mask_w = ((s % W) != (W - 1)) & (s < HW)     # right neighbor stays in row
    mask_h = s < (H - 1) * W                     # below neighbor stays in image
    masks = jnp.asarray(np.stack([mask_w, mask_h]).astype(np.float32))

    shift_w = HWp - 1                            # brings x[s+1] to position s
    shift_h = HWp - W                            # brings x[s+W] to position s
    if shift_h == 0:                             # H == 1: term fully masked anyway
        shift_h = shift_w

    # Block sizing: ~2 MiB of input bytes per block, with the f32 intermediate
    # tile also capped at ~2 MiB (safe on v5e's 16 MiB default scoped VMEM and
    # under v7x's 64 MiB physical VMEM together with the raised limit above).
    itemsize = jnp.dtype(x.dtype).itemsize
    if tile_b is None:
        per_row_bytes = HWp * max(itemsize, 4)
        tile_b = max(1, (2 << 20) // per_row_bytes)
    tile_b = min(tile_b, B)
    if tile_b < B:
        tile_b = max(8, (tile_b // 8) * 8)       # sublane-aligned block rows
        tile_b = min(tile_b, B)

    num_blocks = B // tile_b
    cores = 2 if num_blocks >= 2 else 1          # split batch across both TCs (v7x)
    inner = num_blocks // cores
    covered = cores * inner * tile_b

    total = _tv_partial(x2, masks, tile_b=tile_b, cores=cores, inner=inner,
                        shift_w=shift_w, shift_h=shift_h)

    rem = B - covered                            # ragged tail (< 2*tile_b rows)
    if rem > 0:
        total = total + _tv_partial(x2[covered:], masks, tile_b=rem, cores=1,
                                    inner=1, shift_w=shift_w, shift_h=shift_h)
    return total


def _tv_ref(x):
    return (jnp.sum(jnp.abs(x[:, :, :, :-1] - x[:, :, :, 1:]))
            + jnp.sum(jnp.abs(x[:, :, :-1, :] - x[:, :, 1:, :])))


if __name__ == "__main__":
    key = jax.random.PRNGKey(0)

    # Main case from the module spec.
    x = jax.random.normal(key, (2, 4, 16, 16), dtype=jnp.float32)
    out = jax.block_until_ready(tv_loss(x))
    ref = _tv_ref(x)
    assert jnp.allclose(out, ref, rtol=1e-5, atol=1e-2), (out, ref)

    # Extra coverage: ragged batch tail (epilogue path) and the 2-slice
    # ("parallel") main grid, with H != W to catch mask/shift mix-ups.
    for shape, tb in (
        ((2, 5, 8, 16), 8),   # B=10: 1 main block + 2-row epilogue
        ((4, 4, 8, 16), 8),   # B=16: 2 main blocks -> 2 parallel slices
    ):
        key, sub = jax.random.split(key)
        xt = jax.random.normal(sub, shape, dtype=jnp.float32)
        o = jax.block_until_ready(tv_loss(xt, tile_b=tb))
        r = _tv_ref(xt)
        assert jnp.allclose(o, r, rtol=1e-5, atol=1e-2), (shape, o, r)

    print("KERNEL_OK")
</pallas_src>

<mosaic_0001>
module attributes {stable_mosaic.version = 11 : i64} {
  func.func @_tv_kernel(%arg0: i32, %arg1: i32, %arg2: memref<8x256xf32, #tpu.memory_space<vmem>>, %arg3: memref<2x256xf32, #tpu.memory_space<vmem>>, %arg4: memref<1x1x1xf32, #tpu.memory_space<vmem>>, %arg5: memref<8x256xf32, #tpu.memory_space<vmem>>) attributes {dimension_semantics = [#tpu.dimension_semantics<parallel>, #tpu.dimension_semantics<arbitrary>], iteration_bounds = array<i64: 1, 1>, scalar_prefetch = 0 : i64, scratch_operands = 1 : i64, tpu.core_type = #tpu.core_type<tc>, window_params = [{transform_indices = @transform_0, window_bounds = array<i64: 8, 256>}, {pipeline_mode = #tpu.pipeline_mode<synchronous>, transform_indices = @transform_1, window_bounds = array<i64: 2, 256>}, {transform_indices = @transform_2, window_bounds = array<i64: 1, 1, 1>}]} {
    %c0_i32 = arith.constant 0 : i32
    %0 = arith.cmpi eq, %arg1, %c0_i32 : i32
    %1 = arith.extui %0 : i1 to i32
    %c0_i32_0 = arith.constant 0 : i32
    %2 = arith.cmpi ne, %1, %c0_i32_0 : i32
    scf.if %2 {
      %cst = arith.constant 0.000000e+00 : f32
      %23 = vector.broadcast %cst : f32 to vector<8x256xf32>
      %c0_11 = arith.constant 0 : index
      %c0_12 = arith.constant 0 : index
      %24 = vector.load %arg5[%c0_11, %c0_12] : memref<8x256xf32, #tpu.memory_space<vmem>>, vector<8x256xf32>
      tpu.vector_store %arg5[%c0_11, %c0_12], %23 {strides = array<i32>} : memref<8x256xf32, #tpu.memory_space<vmem>>, vector<8x256xf32>,
    } else {
    }
    %c0 = arith.constant 0 : index
    %c0_1 = arith.constant 0 : index
    %3 = vector.load %arg2[%c0, %c0_1] : memref<8x256xf32, #tpu.memory_space<vmem>>, vector<8x256xf32>
    %c0_2 = arith.constant 0 : index
    %c0_3 = arith.constant 0 : index
    %4 = vector.load %arg3[%c0_2, %c0_3] : memref<2x256xf32, #tpu.memory_space<vmem>>, vector<1x256xf32>
    %c1 = arith.constant 1 : index
    %c0_4 = arith.constant 0 : index
    %5 = vector.load %arg3[%c1, %c0_4] : memref<2x256xf32, #tpu.memory_space<vmem>>, vector<1x256xf32>
    %c255_i32 = arith.constant 255 : i32
    %6 = tpu.dynamic_rotate %3 by %c255_i32 dim 1 : vector<8x256xf32>, i32 -> vector<8x256xf32>
    %c240_i32 = arith.constant 240 : i32
    %7 = tpu.dynamic_rotate %3 by %c240_i32 dim 1 : vector<8x256xf32>, i32 -> vector<8x256xf32>
    %c0_5 = arith.constant 0 : index
    %c0_6 = arith.constant 0 : index
    %8 = vector.load %arg5[%c0_5, %c0_6] : memref<8x256xf32, #tpu.memory_space<vmem>>, vector<8x256xf32>
    %9 = arith.subf %6, %3 : vector<8x256xf32>
    %10 = math.absf %9 : vector<8x256xf32>
    %11 = vector.broadcast %4 : vector<1x256xf32> to vector<8x256xf32>
    %12 = arith.mulf %10, %11 : vector<8x256xf32>
    %13 = arith.subf %7, %3 : vector<8x256xf32>
    %14 = math.absf %13 : vector<8x256xf32>
    %15 = vector.broadcast %5 : vector<1x256xf32> to vector<8x256xf32>
    %16 = arith.mulf %14, %15 : vector<8x256xf32>
    %17 = arith.addf %12, %16 : vector<8x256xf32>
    %18 = arith.addf %8, %17 : vector<8x256xf32>
    %c0_7 = arith.constant 0 : index
    %c0_8 = arith.constant 0 : index
    %19 = vector.load %arg5[%c0_7, %c0_8] : memref<8x256xf32, #tpu.memory_space<vmem>>, vector<8x256xf32>
    tpu.vector_store %arg5[%c0_7, %c0_8], %18 {strides = array<i32>} : memref<8x256xf32, #tpu.memory_space<vmem>>, vector<8x256xf32>,
    %c0_i32_9 = arith.constant 0 : i32
    %20 = arith.cmpi eq, %arg1, %c0_i32_9 : i32
    %21 = arith.extui %20 : i1 to i32
    %c0_i32_10 = arith.constant 0 : i32
    %22 = arith.cmpi ne, %21, %c0_i32_10 : i32
    scf.if %22 {
      %c0_11 = arith.constant 0 : index
      %c0_12 = arith.constant 0 : index
      %23 = vector.load %arg5[%c0_11, %c0_12] : memref<8x256xf32, #tpu.memory_space<vmem>>, vector<8x256xf32>
      %24 = vector.shape_cast %23 : vector<8x256xf32> to vector<1x8x256xf32>
      %cst = arith.constant dense<0.000000e+00> : vector<1xf32>
      %25 = vector.multi_reduction <add>, %24, %cst [1, 2] : vector<1x8x256xf32> to vector<1xf32>
      %26 = vector.shape_cast %25 : vector<1xf32> to vector<1x1x1xf32>
      %27 = vector.extract %26[0, 0, 0] : f32 from vector<1x1x1xf32>
      %28 = vector.broadcast %27 : f32 to vector<1x1x1xf32>
      %c0_13 = arith.constant 0 : index
      %c0_14 = arith.constant 0 : index
      %c0_15 = arith.constant 0 : index
      %29 = vector.load %arg4[%c0_13, %c0_14, %c0_15] : memref<1x1x1xf32, #tpu.memory_space<vmem>>, vector<1x1x1xf32>
      tpu.vector_store %arg4[%c0_13, %c0_14, %c0_15], %28 {strides = array<i32>} : memref<1x1x1xf32, #tpu.memory_space<vmem>>, vector<1x1x1xf32>,
    } else {
    }
    return
  }
  func.func @transform_0(%arg0: i32, %arg1: i32) -> (i32, i32) {
    %c1_i32 = arith.constant 1 : i32
    %0 = arith.muli %arg0, %c1_i32 : i32
    %1 = arith.addi %0, %arg1 : i32
    %c0_i32 = arith.constant 0 : i32
    %c0_i32_0 = arith.constant 0 : i32
    return %1, %c0_i32 : i32, i32
  }
  func.func @transform_1(%arg0: i32, %arg1: i32) -> (i32, i32) {
    %c0_i32 = arith.constant 0 : i32
    %c0_i32_0 = arith.constant 0 : i32
    %c0_i32_1 = arith.constant 0 : i32
    return %c0_i32, %c0_i32_0 : i32, i32
  }
  func.func @transform_2(%arg0: i32, %arg1: i32) -> (i32, i32, i32) {
    %c0_i32 = arith.constant 0 : i32
    %c0_i32_0 = arith.constant 0 : i32
    %c0_i32_1 = arith.constant 0 : i32
    return %arg0, %c0_i32, %c0_i32_0 : i32, i32, i32
  }
}

</mosaic_0001>

<bundles_post_ra>
// kernel: tpu_custom_call.1
= control target key start
LH: loop header
LB: loop body
LE: loop exit
PB: predicated region body
PF: predicated region fallthrough
CT: control target
= control target key end

     0   :  { %7 = vsyncpa [#allocation4], 0  ;;  %s279_s0 = inlined_call_operand.hbm [shape: f32[8,256], index: 0, kind: input, shape index: {}]   ;;  %s280_s1 = inlined_call_operand.hbm [shape: f32[2,256], index: 1, kind: input, shape index: {}]   ;;  %s281_s2 = inlined_call_operand.hbm [shape: f32[1,1,1], index: 2, kind: output, shape index: {}]  }
   0x1   :  { %8 = vsyncpa [#allocation7], 0 }
   0x2   :  { %9 = vsyncpa [#allocation5], 0  ;;  %s223_s9 = smov [#allocation3]   ;;  %s224_s11 = smov [#allocation6]  }
   0x3   :  { %s20_s10 = sshll.u32 %s223_s9, 4  ;;  %s30_s12 = sshll.u32 %s224_s11, 4  ;;  %s21_s10 = int_to_ptr.vmem [resolvable:$true] %s20_s10  ;;  %s31_s12 = int_to_ptr.vmem [resolvable:$true] %s30_s12 }
   0x4   :  { %s151_s15 = scalar_lea.hbm %s279_s0, 256 }
   0x5   :  { %p152_p0 = scmp.ne.s32.totalorder %s279_s0, %s151_s15  ;;  %p155_p1 = scmp.lt.u32.totalorder %s151_s15, %s279_s0 }
   0x7   :  { %p157_p2 = pnand %p155_p1, %p152_p0 }
   0x9   :  { %160 = shalt.err (!%p157_p2)
}
   0xa   :  { %s161_s20 = scalar_lea.vmem %s21_s10, 256  ;;  %p166_p4 = scmp.lt.s32.totalorder %s21_s10, %s21_s10 }
   0xb   :  { %p162_p3 = scmp.ne.s32.totalorder %s21_s10, %s161_s20  ;;  %p167_p5 = scmp.lt.s32.totalorder %s161_s20, %s161_s20 }
   0xd   :  { %p168_p6 = por %p167_p5, %p166_p4 }
   0xf   :  { %p169_p7 = pnand %p168_p6, %p162_p3 }
  0x11   :  { %172 = shalt.err (!%p169_p7)
}
  0x12   :  { %23 = dma.hbm_to_vmem [thread:$0]  %s279_s0, 256, %s21_s10, [#allocation4]  }
  0x13   :  { %s173_s25 = scalar_lea.hbm %s280_s1, 64 }
  0x14   :  { %p174_p8 = scmp.ne.s32.totalorder %s280_s1, %s173_s25  ;;  %p177_p9 = scmp.lt.u32.totalorder %s173_s25, %s280_s1 }
  0x16   :  { %p179_p10 = pnand %p177_p9, %p174_p8 }
  0x18   :  { %182 = shalt.err (!%p179_p10)
}
  0x19   :  { %s183_s30 = scalar_lea.vmem %s31_s12, 64  ;;  %p188_p12 = scmp.lt.s32.totalorder %s31_s12, %s31_s12 }
  0x1a   :  { %p184_p11 = scmp.ne.s32.totalorder %s31_s12, %s183_s30  ;;  %p189_p13 = scmp.lt.s32.totalorder %s183_s30, %s183_s30 }
  0x1c   :  { %p190_p0 = por %p189_p13, %p188_p12 }
  0x1e   :  { %p191_p1 = pnand %p190_p0, %p184_p11 }
  0x20   :  { %194 = shalt.err (!%p191_p1)
}
  0x21   :  { %33 = dma.hbm_to_vmem [thread:$0]  %s280_s1, 64, %s31_s12, [#allocation7]  }
  0x22   :  { %217 = dma.done.wait [#allocation4], 256  }
  0x23   :  { %218 = vsyncadd [#allocation4], 4294967040 }
  0x24   :  { %219 = dma.done.wait [#allocation7], 64  }
  0x25   :  { %220 = vsyncadd [#allocation7], 4294967232  ;;  %v47_v0 = vld [vmem:[#allocation3] sm:$0xff]  ;;  %s225_s4 = smov 112   ;;  %s226_s5 = smov 127   ;;  %v48_v1 = vld [vmem:[#allocation3 + $0x8] sm:$0xff]  ;;  %v56_v2 = vlaneseq }
  0x26   :  { %61 = vrot.lane.b32.xlu1 %v47_v0, %s225_s4  ;;  %52 = vrot.lane.b32.xlu0 %v47_v0, %s226_s5  ;;  %v51_v9 = vld [vmem:[#allocation6 + $0x1] ss:$2 sm:$0x3]  ;;  %v49_v10 = vld [vmem:[#allocation6] ss:$2 sm:$0x3] }
  0x27   :  { %v76_v3 = vshrl.u32 %v56_v2, 7  ;;  %v57_v4 = vand.u32 127, %v56_v2  ;;  %s227_s1 = smov [#allocation8]   ;;  %vm126_vm2 = vcmask 0  }
  0x28   :  { %s134_s6 = sshll.u32 %s227_s1, 4  ;;  %s135_s6 = int_to_ptr.vmem [resolvable:$true] %s134_s6 }
  0x29   :  { %v77_v7 = vsub.s32 0, %v76_v3  ;;  %v81_v8 = vsub.s32 1, %v76_v3  ;;  %vm65_vm0 = vcmp.lt.s32.totalorder %v57_v4, 112  ;;  %vm58_vm1 = vcmp.lt.s32.totalorder %v57_v4, 127  ;;  %s195_s8 = scalar_lea.vmem %s135_s6, 16  ;;  %s199_s9 = scalar_lea.vmem %s135_s6, 32 }
  0x2a   :  { %63 = vrot.lane.b32.xlu1 %v48_v1, %s225_s4  ;;  %54 = vrot.lane.b32.xlu0 %v48_v1, %s226_s5  ;;  %p196_p2 = scmp.ne.s32.totalorder %s135_s6, %s195_s8  ;;  %p200_p3 = scmp.lt.s32.totalorder %s135_s6, %s135_s6 }
  0x2b   :  { %v95_v11 = vrot.slane %v51_v9, %v77_v7  ;;  %v99_v12 = vrot.slane %v51_v9, %v81_v8  ;;  %v78_v14 = vrot.slane %v49_v10, %v77_v7  ;;  %v82_v24 = vrot.slane %v49_v10, %v81_v8  ;;  %p201_p4 = scmp.lt.s32.totalorder %s199_s9, %s195_s8 }
  0x2d   :  { %p202_p5 = por %p201_p4, %p200_p3 }
  0x2f   :  { %p203_p6 = pnand %p202_p5, %p196_p2 }
  0x98   :  { %v62_v5 = vpop.permute.xlu1 %61  ;;  %v53_v6 = vpop.permute.xlu0 %52 }
  0x9c   :  { %v64_v13 = vpop.permute.xlu1 %63  ;;  %v55_v15 = vpop.permute.xlu0 %54 }
  0x9d   :  { %v66_v16 = vsel %vm65_vm0, %v62_v5, %v64_v13  ;;  %v67_v17 = vsel %vm65_vm0, %v64_v13, %v62_v5  ;;  %v59_v18 = vsel %vm58_vm1, %v53_v6, %v55_v15  ;;  %v60_v19 = vsel %vm58_vm1, %v55_v15, %v53_v6 }
  0x9e   :  { %v87_v20 = vsub.f32 %v66_v16, %v47_v0  ;;  %v88_v21 = vsub.f32 %v67_v17, %v48_v1  ;;  %v70_v22 = vsub.f32 %v59_v18, %v47_v0  ;;  %v71_v23 = vsub.f32 %v60_v19, %v48_v1 }
  0xa0   :  { %v89_v25 = vand.u32 2147483647, %v87_v20  ;;  %v90_v26 = vand.u32 2147483647, %v88_v21  ;;  %v72_v27 = vand.u32 2147483647, %v70_v22 }
  0xa1   :  { %v73_v28 = vand.u32 2147483647, %v71_v23 }
  0xa2   :  { %v102_v29 = vmul.f32 %v95_v11, %v89_v25  ;;  %v103_v30 = vmul.f32 %v99_v12, %v90_v26  ;;  %v85_v31 = vmul.f32 %v78_v14, %v72_v27 }
  0xa3   :  { %v86_v32 = vmul.f32 %v82_v24, %v73_v28 }
  0xa4   :  { %v104_v33 = vadd.f32 %v102_v29, %v85_v31 }
  0xa5   :  { %v105_v34 = vadd.f32 %v103_v30, %v86_v32 }
  0xa7   :  { %v115_v35 = vadd.f32 %v105_v34, %v104_v33 }
  0xa9   :  { %116 = vadd.xlane.f32.xlu0 %v115_v35 }
 0x136   :  { %v117_v36 = vpop.xlane.xlu0 %116 }
 0x137   :  { %v118_v37 = vrot.slane %v117_v36, 4 }
 0x139   :  { %v119_v38 = vadd.f32 %v118_v37, %v117_v36 }
 0x13b   :  { %v120_v39 = vrot.slane %v119_v38, 2 }
 0x13d   :  { %v121_v40 = vadd.f32 %v120_v39, %v119_v38 }
 0x13f   :  { %v122_v41 = vrot.slane %v121_v40, 1 }
 0x141   :  { %v123_v42 = vadd.f32 %v122_v41, %v121_v40 }
 0x143   :  { %144 = vpush %v123_v42 }
 0x174   :  { %s145_s7 = spop %144 }
 0x175   :  { %v125_v43 = vstv %s145_s7 }
 0x176   :  { %127 = vst.msk [vmem:[#allocation8] sm:$0x1] %vm126_vm2, %v125_v43 }
 0x177   :  { %206 = shalt.err (!%p203_p6)
}
 0x178   :  { %s207_s12 = scalar_lea.hbm %s281_s2, 16 }
 0x179   :  { %p208_p7 = scmp.ne.s32.totalorder %s281_s2, %s207_s12  ;;  %p211_p8 = scmp.lt.u32.totalorder %s207_s12, %s281_s2 }
 0x17b   :  { %p213_p9 = pnand %p211_p8, %p208_p7 }
 0x17d   :  { %216 = shalt.err (!%p213_p9)
}
 0x17e   :  { %137 = dma.vmem_to_hbm [thread:$0]  %s135_s6, 16, %s281_s2, [#allocation5]  }
 0x17f   :  { %221 = dma.done.wait [#allocation5], 16  }
 0x180   :  { %222 = vsyncadd [#allocation5], 4294967280 }
 0x181   :  { %141 = vsyncpa [#allocation4], 1 }
 0x182   :  { %142 = vsyncpa [#allocation7], 1 }
 0x183   :  { %143 = vsyncpa [#allocation5], 1 }

</bundles_post_ra>
